<compile_context>
chip_gen: v7x
topology: tpu7x:2x2x1
jax: 0.10.0
libtpu: 0.0.40
codegen_flags: <defaults>
</compile_context>

<pallas_src>
import functools

import jax
import jax.numpy as jnp
import numpy as np
from jax.experimental import pallas as pl
from jax.experimental.pallas import tpu as pltpu

_LANE = 128


def _round_up(x, m):
    return ((x + m - 1) // m) * m


def loglinear_kernel(gamma_ref,   # SMEM (1, F)  gamma rule weights (0.5-folded if nonlinear)
                     feats_ref,   # VMEM (F, TN) features, sentences lane-dense
                     vg_ref,      # VMEM (1, TN) valid * sum(gamma) (0.5-folded), or dummy
                     w1_ref,      # VMEM (H, 1)  folded Linear(1, H) weight
                     b1_ref,      # VMEM (H, 1)  folded Linear(1, H) bias
                     w2_ref,      # VMEM (1, H)  folded Linear(H, 1) weight
                     b2_ref,      # VMEM (1, 1)  folded Linear(H, 1) bias
                     out_ref,     # VMEM (1, TN) scores (lane-dense)
                     *, n_feat, add_one, is_non_linear, bf16_hidden):
    # gamma scoring: F scalar-broadcast multiply-adds on the VPU, exact f32.
    s = gamma_ref[0, 0] * feats_ref[pl.ds(0, 1), :].astype(jnp.float32)
    for f in range(1, n_feat):
        s = s + gamma_ref[0, f] * feats_ref[pl.ds(f, 1), :].astype(jnp.float32)

    if add_one:
        # add_one_for_all_feature hoist: (feat+1)@g == feat@g + sum(g) on valid lanes.
        # vg already holds valid * sum(g) (times 0.5 on the nonlinear path).
        s = s + vg_ref[...]

    if is_non_linear:
        # sigmoid(x) = 0.5*tanh(x/2) + 0.5; every 0.5 / bias constant is folded into
        # gamma / vg / w1p / b1p / w2p / b2p in the wrapper, so only tanh + one
        # mul/add per layer remain on the (H, TN) hidden block.
        t0 = jnp.tanh(s)                                   # (1, TN)  EUP
        pre = w1_ref[...] * t0 + b1_ref[...]               # (H, TN)  VPU broadcast
        if bf16_hidden:
            pre = pre.astype(jnp.bfloat16)                 # bf16 EUP path (v6e/v7x)
        t1 = jnp.tanh(pre)                                 # (H, TN)  the hot loop
        s = jnp.dot(w2_ref[...].astype(t1.dtype), t1,
                    preferred_element_type=jnp.float32) + b2_ref[...]   # (1, TN) MXU

    out_ref[...] = s


@functools.partial(
    jax.jit,
    static_argnames=("add_one", "is_non_linear", "tile_n", "bf16_hidden", "prefer_split"))
def _loglinear_impl(features, lengths, gamma_w, w1, b1, w2, b2, *,
                    add_one, is_non_linear, tile_n, bf16_hidden, prefer_split):
    B, L, F = features.shape
    N = B * L

    # ---- tile geometry (all Python ints; shapes/flags are static under jit) ----
    n_lane = _round_up(max(N, 1), _LANE)
    TN = max(_LANE, _round_up(min(int(tile_n), n_lane), _LANE))
    if prefer_split and n_lane >= 2 * _LANE:
        # v7x has 2 TensorCores: make sure the "parallel" grid has >= 2 steps.
        TN = min(TN, _round_up(pl.cdiv(n_lane, 2), _LANE))
    Np = _round_up(n_lane, TN)
    num_tiles = Np // TN

    # ---- mask / valid depend only on lengths; the mask never enters the kernel ----
    lengths = jnp.asarray(lengths, jnp.int32).reshape(B)
    pos = jnp.arange(L, dtype=jnp.int32)[None, :]
    valid = (pos < lengths[:, None]).astype(jnp.float32)          # (B, L)
    mask = 1.0 - valid                                            # gen_mask_with_length

    # ---- features: (B, L, F) -> lane-dense (F, Np); fuses under jit (zero-pad tail) ----
    feats_t = features.reshape(N, F).T                            # keeps input dtype
    if Np != N:
        feats_t = jnp.pad(feats_t, ((0, 0), (0, Np - N)))

    # ---- fold constants into the weights (sigmoid(x) = 0.5*tanh(x/2) + 0.5) ----
    gamma_w = gamma_w.astype(jnp.float32).reshape(1, F)
    gsum = jnp.sum(gamma_w)
    if is_non_linear:
        gamma_k = 0.5 * gamma_w           # folds the x/2 of the first sigmoid
        vscale = 0.5 * gsum
    else:
        gamma_k = gamma_w
        vscale = gsum

    if add_one:
        vg_row = valid.reshape(1, N) * vscale                     # f32: keeps hoist exact
        if Np != N:
            vg_row = jnp.pad(vg_row, ((0, 0), (0, Np - N)))
        vg_spec = pl.BlockSpec((1, TN), lambda i: (0, i))
    else:
        vg_row = jnp.zeros((1, _LANE), jnp.float32)               # unused resident dummy
        vg_spec = pl.BlockSpec((1, _LANE), lambda i: (0, 0))

    if is_non_linear:
        w1 = w1.astype(jnp.float32).reshape(-1, 1)                # (H, 1)
        H = w1.shape[0]
        b1 = b1.astype(jnp.float32).reshape(H, 1)
        w2 = w2.astype(jnp.float32).reshape(1, H)
        b2 = b2.astype(jnp.float32).reshape(1, 1)
        w1p = 0.25 * w1                                           # sigmoid->tanh folding
        b1p = 0.5 * b1 + 0.25 * w1
        w2p = 0.5 * w2
        b2p = b2 + 0.5 * jnp.sum(w2)
    else:
        H = 8                                                     # unused dummies
        w1p = jnp.zeros((H, 1), jnp.float32)
        b1p = jnp.zeros((H, 1), jnp.float32)
        w2p = jnp.zeros((1, H), jnp.float32)
        b2p = jnp.zeros((1, 1), jnp.float32)

    kernel = functools.partial(loglinear_kernel, n_feat=F, add_one=add_one,
                               is_non_linear=is_non_linear, bf16_hidden=bf16_hidden)

    grid_spec = pl.GridSpec(
        grid=(num_tiles,),
        in_specs=[
            pl.BlockSpec(memory_space=pltpu.MemorySpace.SMEM),    # gamma scalars
            pl.BlockSpec((F, TN), lambda i: (0, i)),              # lane-dense feature tile
            vg_spec,                                              # valid * sum(gamma)
            pl.BlockSpec((H, 1), lambda i: (0, 0)),               # resident small weights
            pl.BlockSpec((H, 1), lambda i: (0, 0)),
            pl.BlockSpec((1, H), lambda i: (0, 0)),
            pl.BlockSpec((1, 1), lambda i: (0, 0)),
        ],
        out_specs=pl.BlockSpec((1, TN), lambda i: (0, i)),
    )

    scores_row = pl.pallas_call(
        kernel,
        out_shape=jax.ShapeDtypeStruct((1, Np), jnp.float32),
        grid_spec=grid_spec,
        compiler_params=pltpu.CompilerParams(dimension_semantics=("parallel",)),
    )(gamma_k, feats_t, vg_row, w1p, b1p, w2p, b2p)

    scores = scores_row[0, :N].reshape(B, L)
    return scores, mask


def loglinear_forward(features, lengths, params, *, add_one=True, is_non_linear=True,
                      tile_n=2048, hidden_tanh_bf16=None):
    """features: (B, L, F); lengths: (B,) int. Returns (scores (B, L) f32, mask (B, L) f32)."""
    kind = jax.devices()[0].device_kind.lower()
    if hidden_tanh_bf16 is None:
        # bf16 EUP/VPU path exists on v6e/v7x only; keep f32 tanh on older chips.
        hidden_tanh_bf16 = not any(v in kind for v in ("v2", "v3", "v4", "v5"))
    prefer_split = "v7" in kind      # 2 TensorCores per chip -> want >= 2 grid steps

    gamma_w = jnp.asarray(params["gamma_w"], jnp.float32)
    if is_non_linear:
        w1 = jnp.asarray(params["w1"], jnp.float32)
        b1 = jnp.asarray(params["b1"], jnp.float32)
        w2 = jnp.asarray(params["w2"], jnp.float32)
        b2 = jnp.asarray(params["b2"], jnp.float32)
    else:
        w1 = jnp.zeros((8, 1), jnp.float32)
        b1 = jnp.zeros((8, 1), jnp.float32)
        w2 = jnp.zeros((1, 8), jnp.float32)
        b2 = jnp.zeros((1, 1), jnp.float32)

    return _loglinear_impl(
        features, jnp.asarray(lengths, jnp.int32), gamma_w, w1, b1, w2, b2,
        add_one=bool(add_one), is_non_linear=bool(is_non_linear), tile_n=int(tile_n),
        bf16_hidden=bool(hidden_tanh_bf16) and bool(is_non_linear),
        prefer_split=bool(prefer_split))


def loglinear_reference(features, lengths, params, *, add_one=True, is_non_linear=True):
    """Plain-JAX reference mirroring the PyTorch forward (for a sanity check)."""
    B, L, F = features.shape
    pos = jnp.arange(L)[None, :]
    valid = (pos < lengths[:, None]).astype(jnp.float32)          # (B, L)
    feats = features.astype(jnp.float32)
    if add_one:
        feats = feats + valid[..., None]
    s = jnp.einsum("blf,of->blo", feats, params["gamma_w"], precision="highest")
    if is_non_linear:
        s = jax.nn.sigmoid(s)
        s = jax.nn.sigmoid(jnp.einsum("blo,ho->blh", s, params["w1"],
                                      precision="highest") + params["b1"])
        s = jnp.einsum("blh,oh->blo", s, params["w2"], precision="highest") + params["b2"]
    scores = s[..., 0]
    mask = 1.0 - valid
    return scores, mask


# TODO(synk): the raw-text feature extraction (keyword matching, section lookup, GloVe
# section embeddings) is Python/string processing with no Pallas equivalent; the kernel
# consumes the already-assembled (B, L, F) feature tensor instead.

if __name__ == "__main__":
    B, L, F, H = 2, 16, 4, 32    # batch, max sentences per doc, num rules, MLP hidden

    key = jax.random.PRNGKey(0)
    k_feat, k_gamma, k_w1, k_b1, k_w2, k_b2, k_feat2 = jax.random.split(key, 7)

    params = {
        # gamma rule weights (set_rules builds a (1, F) weight matrix, no bias)
        "gamma_w": jax.random.uniform(k_gamma, (1, F), dtype=jnp.float32),
        # Linear(1, H)
        "w1": jax.random.normal(k_w1, (H, 1), dtype=jnp.float32) * 0.5,
        "b1": jax.random.normal(k_b1, (H,), dtype=jnp.float32) * 0.1,
        # Linear(H, 1)
        "w2": jax.random.normal(k_w2, (1, H), dtype=jnp.float32) * 0.5,
        "b2": jax.random.normal(k_b2, (1,), dtype=jnp.float32) * 0.1,
    }

    # Case 1: small doc batch, full nonlinear path (single lane-dense grid step).
    features = jax.random.uniform(k_feat, (B, L, F), dtype=jnp.float32)
    lengths = jnp.array([16, 11], dtype=jnp.int32)
    scores, mask = loglinear_forward(features, lengths, params,
                                     add_one=True, is_non_linear=True)
    jax.block_until_ready((scores, mask))
    ref_scores, ref_mask = loglinear_reference(features, lengths, params,
                                               add_one=True, is_non_linear=True)
    np.testing.assert_allclose(np.asarray(scores), np.asarray(ref_scores),
                               rtol=1e-2, atol=1e-2)
    np.testing.assert_allclose(np.asarray(mask), np.asarray(ref_mask), rtol=0, atol=0)

    # Case 2: pure log-linear path -- the VPU gamma dot is exact f32.
    scores2, mask2 = loglinear_forward(features, lengths, params,
                                       add_one=False, is_non_linear=False)
    jax.block_until_ready((scores2, mask2))
    ref_scores2, ref_mask2 = loglinear_reference(features, lengths, params,
                                                 add_one=False, is_non_linear=False)
    np.testing.assert_allclose(np.asarray(scores2), np.asarray(ref_scores2),
                               rtol=1e-5, atol=1e-5)
    np.testing.assert_allclose(np.asarray(mask2), np.asarray(ref_mask2), rtol=0, atol=0)

    # Case 3: longer docs + small tile_n -> multiple grid steps and a zero-padded tail tile.
    B3, L3 = 2, 200
    features3 = jax.random.uniform(k_feat2, (B3, L3, F), dtype=jnp.float32)
    lengths3 = jnp.array([200, 137], dtype=jnp.int32)
    scores3, mask3 = loglinear_forward(features3, lengths3, params,
                                       add_one=True, is_non_linear=True, tile_n=256)
    jax.block_until_ready((scores3, mask3))
    ref_scores3, ref_mask3 = loglinear_reference(features3, lengths3, params,
                                                 add_one=True, is_non_linear=True)
    np.testing.assert_allclose(np.asarray(scores3), np.asarray(ref_scores3),
                               rtol=1e-2, atol=1e-2)
    np.testing.assert_allclose(np.asarray(mask3), np.asarray(ref_mask3), rtol=0, atol=0)

    # Case 4: bf16 features (halved HBM read stream), log-linear path with add_one hoist.
    features4 = features3.astype(jnp.bfloat16)
    scores4, mask4 = loglinear_forward(features4, lengths3, params,
                                       add_one=True, is_non_linear=False)
    jax.block_until_ready((scores4, mask4))
    ref_scores4, ref_mask4 = loglinear_reference(features4, lengths3, params,
                                                 add_one=True, is_non_linear=False)
    np.testing.assert_allclose(np.asarray(scores4), np.asarray(ref_scores4),
                               rtol=1e-5, atol=1e-5)
    np.testing.assert_allclose(np.asarray(mask4), np.asarray(ref_mask4), rtol=0, atol=0)

    print("KERNEL_OK")
</pallas_src>

<mosaic_0001>
module attributes {stable_mosaic.version = 11 : i64} {
  func.func @loglinear_kernel(%arg0: i32, %arg1: memref<1x4xf32, #tpu.memory_space<smem>>, %arg2: memref<4x128xf32, #tpu.memory_space<vmem>>, %arg3: memref<1x128xf32, #tpu.memory_space<vmem>>, %arg4: memref<32x1xf32, #tpu.memory_space<vmem>>, %arg5: memref<32x1xf32, #tpu.memory_space<vmem>>, %arg6: memref<1x32xf32, #tpu.memory_space<vmem>>, %arg7: memref<1x1xf32, #tpu.memory_space<vmem>>, %arg8: memref<1x128xf32, #tpu.memory_space<vmem>>) attributes {dimension_semantics = [#tpu.dimension_semantics<parallel>], iteration_bounds = array<i64: 1>, scalar_prefetch = 0 : i64, scratch_operands = 0 : i64, tpu.core_type = #tpu.core_type<tc>, window_params = [{transform_indices = @transform_0, window_bounds = array<i64: 1, 4>}, {transform_indices = @transform_1, window_bounds = array<i64: 4, 128>}, {transform_indices = @transform_2, window_bounds = array<i64: 1, 128>}, {pipeline_mode = #tpu.pipeline_mode<synchronous>, transform_indices = @transform_3, window_bounds = array<i64: 32, 1>}, {pipeline_mode = #tpu.pipeline_mode<synchronous>, transform_indices = @transform_4, window_bounds = array<i64: 32, 1>}, {pipeline_mode = #tpu.pipeline_mode<synchronous>, transform_indices = @transform_5, window_bounds = array<i64: 1, 32>}, {pipeline_mode = #tpu.pipeline_mode<synchronous>, transform_indices = @transform_6, window_bounds = array<i64: 1, 1>}, {transform_indices = @transform_7, window_bounds = array<i64: 1, 128>}]} {
    %c0 = arith.constant 0 : index
    %c0_0 = arith.constant 0 : index
    %0 = memref.load %arg1[%c0, %c0_0] : memref<1x4xf32, #tpu.memory_space<smem>>
    %c0_1 = arith.constant 0 : index
    %c0_2 = arith.constant 0 : index
    %1 = vector.load %arg2[%c0_1, %c0_2] : memref<4x128xf32, #tpu.memory_space<vmem>>, vector<1x128xf32>
    %2 = vector.broadcast %0 : f32 to vector<1x128xf32>
    %3 = arith.mulf %2, %1 : vector<1x128xf32>
    %c0_3 = arith.constant 0 : index
    %c1 = arith.constant 1 : index
    %4 = memref.load %arg1[%c0_3, %c1] : memref<1x4xf32, #tpu.memory_space<smem>>
    %c1_4 = arith.constant 1 : index
    %c0_5 = arith.constant 0 : index
    %5 = vector.load %arg2[%c1_4, %c0_5] : memref<4x128xf32, #tpu.memory_space<vmem>>, vector<1x128xf32>
    %6 = vector.broadcast %4 : f32 to vector<1x128xf32>
    %7 = arith.mulf %6, %5 : vector<1x128xf32>
    %8 = arith.addf %3, %7 : vector<1x128xf32>
    %c0_6 = arith.constant 0 : index
    %c2 = arith.constant 2 : index
    %9 = memref.load %arg1[%c0_6, %c2] : memref<1x4xf32, #tpu.memory_space<smem>>
    %c2_7 = arith.constant 2 : index
    %c0_8 = arith.constant 0 : index
    %10 = vector.load %arg2[%c2_7, %c0_8] : memref<4x128xf32, #tpu.memory_space<vmem>>, vector<1x128xf32>
    %11 = vector.broadcast %9 : f32 to vector<1x128xf32>
    %12 = arith.mulf %11, %10 : vector<1x128xf32>
    %13 = arith.addf %8, %12 : vector<1x128xf32>
    %c0_9 = arith.constant 0 : index
    %c3 = arith.constant 3 : index
    %14 = memref.load %arg1[%c0_9, %c3] : memref<1x4xf32, #tpu.memory_space<smem>>
    %c3_10 = arith.constant 3 : index
    %c0_11 = arith.constant 0 : index
    %15 = vector.load %arg2[%c3_10, %c0_11] : memref<4x128xf32, #tpu.memory_space<vmem>>, vector<1x128xf32>
    %16 = vector.broadcast %14 : f32 to vector<1x128xf32>
    %17 = arith.mulf %16, %15 : vector<1x128xf32>
    %18 = arith.addf %13, %17 : vector<1x128xf32>
    %c0_12 = arith.constant 0 : index
    %c0_13 = arith.constant 0 : index
    %19 = vector.load %arg3[%c0_12, %c0_13] : memref<1x128xf32, #tpu.memory_space<vmem>>, vector<1x128xf32>
    %20 = arith.addf %18, %19 : vector<1x128xf32>
    %21 = math.tanh %20 : vector<1x128xf32>
    %c0_14 = arith.constant 0 : index
    %c0_15 = arith.constant 0 : index
    %22 = vector.load %arg4[%c0_14, %c0_15] : memref<32x1xf32, #tpu.memory_space<vmem>>, vector<32x1xf32>
    %23 = vector.broadcast %22 : vector<32x1xf32> to vector<32x128xf32>
    %24 = vector.broadcast %21 : vector<1x128xf32> to vector<32x128xf32>
    %25 = arith.mulf %23, %24 : vector<32x128xf32>
    %c0_16 = arith.constant 0 : index
    %c0_17 = arith.constant 0 : index
    %26 = vector.load %arg5[%c0_16, %c0_17] : memref<32x1xf32, #tpu.memory_space<vmem>>, vector<32x1xf32>
    %27 = vector.broadcast %26 : vector<32x1xf32> to vector<32x128xf32>
    %28 = arith.addf %25, %27 : vector<32x128xf32>
    %29 = arith.truncf %28 : vector<32x128xf32> to vector<32x128xbf16>
    %30 = math.tanh %29 : vector<32x128xbf16>
    %c0_18 = arith.constant 0 : index
    %c0_19 = arith.constant 0 : index
    %31 = vector.load %arg6[%c0_18, %c0_19] : memref<1x32xf32, #tpu.memory_space<vmem>>, vector<1x32xf32>
    %32 = arith.truncf %31 : vector<1x32xf32> to vector<1x32xbf16>
    %cst = arith.constant dense<0.000000e+00> : vector<1x128xf32>
    %33 = tpu.matmul %32, %30, %cst {dimension_numbers = #tpu.dot_dimension_numbers<[1], [0], [0], [1], [0, 0, 1, 1], [], []>} : vector<1x32xbf16>, vector<32x128xbf16>, vector<1x128xf32> -> vector<1x128xf32>
    %c0_20 = arith.constant 0 : index
    %c0_21 = arith.constant 0 : index
    %34 = vector.load %arg7[%c0_20, %c0_21] : memref<1x1xf32, #tpu.memory_space<vmem>>, vector<1x1xf32>
    %35 = vector.broadcast %34 : vector<1x1xf32> to vector<1x128xf32>
    %36 = arith.addf %33, %35 : vector<1x128xf32>
    %c0_22 = arith.constant 0 : index
    %c0_23 = arith.constant 0 : index
    %37 = vector.load %arg8[%c0_22, %c0_23] : memref<1x128xf32, #tpu.memory_space<vmem>>, vector<1x128xf32>
    tpu.vector_store %arg8[%c0_22, %c0_23], %36 {strides = array<i32>} : memref<1x128xf32, #tpu.memory_space<vmem>>, vector<1x128xf32>,
    return
  }
  func.func @transform_0(%arg0: i32) -> (i32, i32) {
    %c0_i32 = arith.constant 0 : i32
    %c0_i32_0 = arith.constant 0 : i32
    %c0_i32_1 = arith.constant 0 : i32
    return %c0_i32, %c0_i32_0 : i32, i32
  }
  func.func @transform_1(%arg0: i32) -> (i32, i32) {
    %c0_i32 = arith.constant 0 : i32
    %c0_i32_0 = arith.constant 0 : i32
    return %c0_i32, %arg0 : i32, i32
  }
  func.func @transform_2(%arg0: i32) -> (i32, i32) {
    %c0_i32 = arith.constant 0 : i32
    %c0_i32_0 = arith.constant 0 : i32
    return %c0_i32, %arg0 : i32, i32
  }
  func.func @transform_3(%arg0: i32) -> (i32, i32) {
    %c0_i32 = arith.constant 0 : i32
    %c0_i32_0 = arith.constant 0 : i32
    %c0_i32_1 = arith.constant 0 : i32
    return %c0_i32, %c0_i32_0 : i32, i32
  }
  func.func @transform_4(%arg0: i32) -> (i32, i32) {
    %c0_i32 = arith.constant 0 : i32
    %c0_i32_0 = arith.constant 0 : i32
    %c0_i32_1 = arith.constant 0 : i32
    return %c0_i32, %c0_i32_0 : i32, i32
  }
  func.func @transform_5(%arg0: i32) -> (i32, i32) {
    %c0_i32 = arith.constant 0 : i32
    %c0_i32_0 = arith.constant 0 : i32
    %c0_i32_1 = arith.constant 0 : i32
    return %c0_i32, %c0_i32_0 : i32, i32
  }
  func.func @transform_6(%arg0: i32) -> (i32, i32) {
    %c0_i32 = arith.constant 0 : i32
    %c0_i32_0 = arith.constant 0 : i32
    %c0_i32_1 = arith.constant 0 : i32
    return %c0_i32, %c0_i32_0 : i32, i32
  }
  func.func @transform_7(%arg0: i32) -> (i32, i32) {
    %c0_i32 = arith.constant 0 : i32
    %c0_i32_0 = arith.constant 0 : i32
    return %c0_i32, %arg0 : i32, i32
  }
}

</mosaic_0001>

<bundles_post_ra>
// kernel: squeeze.1
= control target key start
LH: loop header
LB: loop body
LE: loop exit
PB: predicated region body
PF: predicated region fallthrough
CT: control target
= control target key end

     0   :  { %s85_s0 = inlined_call_operand.vmem [shape: f32[32], index: 0, kind: input, shape index: {}]   ;;  %s86_s1 = inlined_call_operand.hbm [shape: f32[2,16], index: 1, kind: output, shape index: {}]  }
   0x1   :  { %v5_v0 = vld [vmem:[%s85_s0] sm:$0x1] }
   0x2   :  { %2 = vsyncpa [#allocation1], 0  ;;  %6 = vst [vmem:[#allocation3] sm:$0x1] %v5_v0  ;;  %vm8_vm0 = vcmask 130048   ;;  %s58_s0 = smov 112  }
   0x3   :  { %s59_s8 = smov [#allocation0]  }
   0x4   :  { %s26_s9 = sshll.u32 %s59_s8, 4  ;;  %s27_s9 = int_to_ptr.vmem [resolvable:$true] %s26_s9 }
   0x5   :  { %s34_s10 = scalar_lea.vmem %s27_s9, 32  ;;  %p39_p1 = scmp.lt.s32.totalorder %s27_s9, %s27_s9 }
   0x6   :  { %p35_p0 = scmp.ne.s32.totalorder %s27_s9, %s34_s10  ;;  %p40_p2 = scmp.lt.s32.totalorder %s34_s10, %s34_s10 }
   0x8   :  { %p41_p3 = por %p40_p2, %p39_p1 }
   0x9   :  { %v10_v1 = vld [vmem:[#allocation3] sm:$0x1]  }
   0xa   :  { %v7_v2 = vld [vmem:[#allocation3] sm:$0x1]   ;;  %11 = vrot.lane.b32.xlu0 %v10_v1, %s58_s0  ;;  %p42_p4 = pnand %p41_p3, %p35_p0 }
   0xb   :  { %9 = vst.msk [vmem:[#allocation2] sm:$0x1] %vm8_vm0, %v7_v2  }
  0x7c   :  { %v12_v3 = vpop.permute.xlu0 %11  }
  0x7d   :  { %15 = vst.msk [vmem:[#allocation2 + $0x1] sm:$0x1] %vm8_vm0, %v12_v3  }
  0x84   :  { %v19_v4 = vld [vmem:[#allocation2] sm:$0x3] }
  0x85   :  { %21 = vst [vmem:[#allocation0] sm:$0x3] %v19_v4 }
  0x86   :  { %45 = shalt.err (!%p42_p4)
}
  0x87   :  { %s46_s13 = scalar_lea.hbm %s86_s1, 32 }
  0x88   :  { %p47_p5 = scmp.ne.s32.totalorder %s86_s1, %s46_s13  ;;  %p50_p6 = scmp.lt.u32.totalorder %s46_s13, %s86_s1 }
  0x8a   :  { %p52_p7 = pnand %p50_p6, %p47_p5 }
  0x8c   :  { %55 = shalt.err (!%p52_p7)
}
  0x8d   :  { %29 = dma.vmem_to_hbm [thread:$0]  %s27_s9, 32, %s86_s1, [#allocation1]  }
  0x8e   :  { %56 = dma.done.wait [#allocation1], 32  }
  0x8f   :  { %57 = vsyncadd [#allocation1], 4294967264 }
  0x90   :  { %31 = vsyncpa [#allocation1], 1 }

// kernel: _loglinear_impl.1
= control target key start
LH: loop header
LB: loop body
LE: loop exit
PB: predicated region body
PF: predicated region fallthrough
CT: control target
= control target key end

     0   :  { %s326_s0 = inlined_call_operand.vmem [shape: f32[1,4], index: 0, kind: input, shape index: {}]   ;;  %s327_s1 = inlined_call_operand.vmem [shape: f32[4,128], index: 1, kind: input, shape index: {}]   ;;  %s328_s2 = inlined_call_operand.vmem [shape: f32[1,128], index: 2, kind: input, shape index: {}]   ;;  %s329_s3 = inlined_call_operand.vmem [shape: f32[32,1], index: 3, kind: input, shape index: {}]   ;;  %s330_s4 = inlined_call_operand.vmem [shape: f32[32,1], index: 4, kind: input, shape index: {}]   ;;  %s331_s5 = inlined_call_operand.vmem [shape: f32[1,32], index: 5, kind: input, shape index: {}]   ;;  %s332_s6 = inlined_call_operand.<no memory space> [shape: f32[1,1], index: 6, kind: input, shape index: {}]   ;;  %s333_s7 = inlined_call_operand.vmem [shape: f32[1,128], index: 7, kind: output, shape index: {}]  }
   0x1   :  { %v12_v0 = vstv %s332_s6 }
   0x2   :  { %13 = vst [vmem:[#allocation2] sm:$0x1] %v12_v0 }
   0x3   :  { %14 = vsyncpa [#allocation4], 0  ;;  %s21_s28 = sshll.u32 %s326_s0, 4  ;;  %s22_s28 = int_to_ptr.vmem [resolvable:$true] %s21_s28 }
   0x4   :  { %s217_s29 = scalar_lea.vmem %s22_s28, 16  ;;  %p222_p1 = scmp.lt.s32.totalorder %s22_s28, %s22_s28 }
   0x5   :  { %p218_p0 = scmp.ne.s32.totalorder %s22_s28, %s217_s29  ;;  %p223_p2 = scmp.lt.s32.totalorder %s217_s29, %s217_s29 }
   0x7   :  { %p224_p3 = por %p223_p2, %p222_p1 }
   0x9   :  { %p225_p4 = pnand %p224_p3, %p218_p0 }
   0xb   :  { %228 = shalt.err (!%p225_p4)
}
   0xc   :  { %s231_s30 = smov [#allocation3]  }
   0xd   :  { %24 = dma.vmem_to_smem %s22_s28, 16, %s231_s30, [#allocation4]  }
   0xe   :  { %229 = dma.done.wait [#allocation4], 16  }
   0xf   :  { %230 = vsyncadd [#allocation4], 4294967280 }
  0x10   :  { %40 = sfence }
  0x11   :  { %v96_v1 = vld [vmem:[%s330_s4] sm:$0xff]  ;;  %v232_v3 = vmov 0   ;;  %v97_v4 = vld [vmem:[%s330_s4 + $0x8] sm:$0xff]  ;;  %v67_v6 = vld [vmem:[%s329_s3 + $0x18] sm:$0xff]  ;;  %v233_v11 = vmov 0.0   ;;  %vm234_vm0 = vmmov 0   ;;  %v88_v29 = vlaneseq }
  0x12   :  { %v64_v2 = vld [vmem:[%s329_s3] sm:$0xff]  ;;  %210 = vset.pattern.permute.xlu1 %v232_v3  ;;  %209 = vset.pattern.permute.xlu0 %v232_v3  ;;  %v65_v5 = vld [vmem:[%s329_s3 + $0x8] sm:$0xff]  ;;  %v66_v7 = vld [vmem:[%s329_s3 + $0x10] sm:$0xff]  ;;  %s42_s22 = sld [smem:[#allocation3]]  ;;  %s190_s3 = sld [smem:[#allocation3 + $0x1]]  ;;  %vm140_vm1 = vcmask 261120  }
  0x13   :  { %102 = vperm.xlu1 %210, %v96_v1   ;;  %70 = vperm.xlu0 %209, %v64_v2   ;;  %v99_v8 = vld [vmem:[%s330_s4 + $0x18] sm:$0xff]  ;;  %v98_v9 = vld [vmem:[%s330_s4 + $0x10] sm:$0xff]  ;;  %v130_v10 = vld [vmem:[#allocation2] sm:$0x1]  ;;  %s191_s23 = sld [smem:[#allocation3 + $0x2]]  ;;  %s192_s4 = sld [smem:[#allocation3 + $0x3]] }
  0x14   :  { %197 = vmatprep.subr.bf16.mxu0 %v233_v11  ;;  %201 = vmatprep.mubr.msk.bf16.mxu0 %vm234_vm0, %v233_v11  ;;  %v43_v12 = vld [vmem:[%s327_s1] sm:$0x1]  ;;  %v47_v14 = vld [vmem:[%s327_s1 + $0x1] sm:$0x1]  ;;  %v52_v18 = vld [vmem:[%s327_s1 + $0x2] sm:$0x1] }
  0x15   :  { %v57_v22 = vld [vmem:[%s327_s1 + $0x3] sm:$0x1]  ;;  %v61_v27 = vld [vmem:[%s328_s2] sm:$0x1]  ;;  %v89_v30 = vshrl.u32 %v88_v29, 7 }
  0x16   :  { %v128_v53 = vld [vmem:[%s331_s5] sm:$0x1] }
  0x17   :  { %107 = vperm.xlu1 %210, %v97_v4   ;;  %75 = vperm.xlu0 %209, %v65_v5   ;;  %v90_v31 = vsub.s32 0, %v89_v30  ;;  %v129_v55 = vpack.c.bf16 %v128_v53, %v128_v53 }
  0x18   :  { %v44_v13 = vstv %s42_s22  ;;  %v48_v15 = vstv %s190_s3 }
  0x19   :  { %v45_v16 = vmul.f32 %v44_v13, %v43_v12  ;;  %v49_v17 = vmul.f32 %v48_v15, %v47_v14  ;;  %v53_v19 = vstv %s191_s23  ;;  %v58_v23 = vstv %s192_s4 }
  0x1a   :  { %v54_v21 = vmul.f32 %v53_v19, %v52_v18  ;;  %v59_v25 = vmul.f32 %v58_v23, %v57_v22 }
  0x1b   :  { %85 = vperm.xlu1 %210, %v67_v6   ;;  %80 = vperm.xlu0 %209, %v66_v7   ;;  %v50_v20 = vadd.f32 %v49_v17, %v45_v16 }
  0x1d   :  { %v55_v24 = vadd.f32 %v54_v21, %v50_v20 }
  0x1f   :  { %117 = vperm.xlu1 %210, %v99_v8   ;;  %112 = vperm.xlu0 %209, %v98_v9   ;;  %v60_v26 = vadd.f32 %v59_v25, %v55_v24 }
  0x21   :  { %v62_v28 = vadd.f32 %v61_v27, %v60_v26 }
  0x23   :  { %133 = vperm.xlu0 %209, %v130_v10   ;;  %211 = vtanh.f32 %v62_v28 }
  0x2d   :  { %v212_v32 = vpop.eup %211 }
  0x2e   :  { %v91_v33 = vrot.slane %v212_v32, %v90_v31 }
  0x92   :  { %v103_v34 = vpop.permute.xlu1 %102  ;;  %v71_v35 = vpop.permute.xlu0 %70 }
  0x93   :  { %v92_v36 = vmul.f32 %v91_v33, %v71_v35 }
  0x95   :  { %v120_v40 = vadd.f32 %v103_v34, %v92_v36 }
  0x96   :  { %v108_v37 = vpop.permute.xlu1 %107  ;;  %v76_v38 = vpop.permute.xlu0 %75 }
  0x97   :  { %v93_v39 = vmul.f32 %v91_v33, %v76_v38 }
  0x99   :  { %v121_v41 = vadd.f32 %v108_v37, %v93_v39 }
  0x9a   :  { %v86_v42 = vpop.permute.xlu1 %85  ;;  %v81_v43 = vpop.permute.xlu0 %80 }
  0x9b   :  { %v124_v44 = vpack.c.bf16 %v121_v41, %v120_v40  ;;  %v95_v45 = vmul.f32 %v91_v33, %v86_v42  ;;  %v94_v46 = vmul.f32 %v91_v33, %v81_v43 }
  0x9d   :  { %213 = vtanh.bf16 %v124_v44 }
  0x9e   :  { %v118_v47 = vpop.permute.xlu1 %117  ;;  %v113_v48 = vpop.permute.xlu0 %112 }
  0x9f   :  { %v123_v49 = vadd.f32 %v118_v47, %v95_v45  ;;  %v122_v50 = vadd.f32 %v113_v48, %v94_v46 }
  0xa1   :  { %v125_v51 = vpack.c.bf16 %v123_v49, %v122_v50 }
  0xa2   :  { %v134_v56 = vpop.permute.xlu0 %133 }
  0xa3   :  { %215 = vtanh.bf16 %v125_v51  ;;  %v139_v57 = vrot.slane %v134_v56, %v90_v31 }
  0xa8   :  { %v214_v52 = vpop.eup %213 }
  0xa9   :  { %198 = vmatpush3.bf16.msra.mxu0 %v214_v52 }
  0xaa   :  { %199 = vmatprep.subr.bf16.mxu0 %v233_v11 }
  0xae   :  { %v216_v54 = vpop.eup %215 }
  0xaf   :  { %200 = vmatpush3.bf16.msra.mxu0 %v216_v54 }
  0xb2   :  { %202 = vmatmul.mubr.msk.bf16.vlgmr.msra.gmra.mrb[0].mxu0 %vm140_vm1, %v129_v55 }
 0x185   :  { %v178_v58 = vpop.f32.mrb[0].mxu0 }
 0x186   :  { %v179_v59 = vadd.f32 %v178_v58, %v139_v57  ;;  %v203_v60 = vpop.f32.mrb[1].mxu0 }
 0x187   :  { %v181_v61 = vpop.f32.mrb[2].mxu0 }
 0x188   :  { %184 = vst [vmem:[%s333_s7] sm:$0x1] %v179_v59  ;;  %v204_v62 = vpop.f32.mrb[3].mxu0 }
 0x189   :  { %189 = vsyncpa [#allocation4], 1 }

</bundles_post_ra>
